<compile_context>
chip_gen: v7x
topology: tpu7x:2x2x1
jax: 0.10.0
libtpu: 0.0.40
codegen_flags: <defaults>
</compile_context>

<pallas_src>
import functools
import math

import jax
import jax.numpy as jnp
from jax import lax
from jax.experimental import pallas as pl
from jax.experimental.pallas import tpu as pltpu

VOCAB = 256   # vocab_size
NINP = 128    # ninp
B, S = 2, 8   # batch, sequence


# ----------------------------------------------------------------------------
# forward path (inverse=False): scaled embedding gather via one-hot MXU matmul
# ----------------------------------------------------------------------------
def _embed_kernel(ids_ref, table_ref, out_ref, *, scale):
    n_tok = out_ref.shape[0]
    vocab = table_ref.shape[0]
    ids = ids_ref[...]                                          # (n_tok, 1) int32
    col = lax.broadcasted_iota(jnp.int32, (n_tok, vocab), 1)    # (n_tok, vocab)
    # OOB ids compare equal to nothing -> zero row == padding row 0 semantics.
    onehot = (col == ids).astype(table_ref.dtype)
    gathered = jnp.dot(onehot, table_ref[...],
                       preferred_element_type=jnp.float32)      # (n_tok, NINP)
    out_ref[...] = (gathered * scale).astype(out_ref.dtype)     # one slab store


def embed_forward(ids, emb_table):
    b, s = ids.shape
    vocab, ninp = emb_table.shape
    n_tok = b * s
    ids2 = ids.reshape(n_tok, 1).astype(jnp.int32)
    scale = float(math.sqrt(ninp))                               # static float

    out = pl.pallas_call(
        functools.partial(_embed_kernel, scale=scale),
        out_shape=jax.ShapeDtypeStruct((n_tok, ninp), emb_table.dtype),
        in_specs=[
            pl.BlockSpec(memory_space=pltpu.MemorySpace.VMEM),   # token ids
            pl.BlockSpec(memory_space=pltpu.MemorySpace.VMEM),   # full table
        ],
        out_specs=pl.BlockSpec(memory_space=pltpu.MemorySpace.VMEM),
    )(ids2, emb_table)
    return out.reshape(b, s, ninp)


# ----------------------------------------------------------------------------
# inverse path (inverse=True): x @ W^T on the MXU, bf16 inputs / f32 accumulate
# ----------------------------------------------------------------------------
def _decoder_kernel(x_ref, w_ref, out_ref):
    out_ref[...] = lax.dot_general(
        x_ref[...], w_ref[...],
        dimension_numbers=(((1,), (1,)), ((), ())),    # contract ninp x ninp
        preferred_element_type=jnp.float32,
    ).astype(out_ref.dtype)


def decode_inverse(x, w):
    b, s, d = x.shape
    v = w.shape[0]
    x2 = x.reshape(b * s, d).astype(jnp.bfloat16)      # MXU-native dtype
    w16 = w.astype(jnp.bfloat16)
    out = pl.pallas_call(
        _decoder_kernel,
        out_shape=jax.ShapeDtypeStruct((b * s, v), jnp.float32),
        in_specs=[
            pl.BlockSpec(memory_space=pltpu.MemorySpace.VMEM),
            pl.BlockSpec(memory_space=pltpu.MemorySpace.VMEM),
        ],
        out_specs=pl.BlockSpec(memory_space=pltpu.MemorySpace.VMEM),
    )(x2, w16)
    return out.reshape(b, s, v)


if __name__ == "__main__":
    key = jax.random.PRNGKey(0)
    k_emb, k_w, k_ids = jax.random.split(key, 3)

    # nn.Embedding-style init, row 0 zeroed (padding_idx=0).
    # TODO(synk): padding_idx gradient masking (training-time) not implemented.
    emb_table = jax.random.normal(k_emb, (VOCAB, NINP), dtype=jnp.float32)
    emb_table = emb_table.at[0].set(0.0)

    # nn.Linear(ninp, vocab, bias=False) weight: (vocab, ninp)
    bound = 1.0 / math.sqrt(NINP)
    w_dec = jax.random.uniform(
        k_w, (VOCAB, NINP), minval=-bound, maxval=bound, dtype=jnp.float32)

    # token ids, include a padding token to exercise padding_idx row
    ids = jax.random.randint(k_ids, (B, S), 0, VOCAB, dtype=jnp.int32)
    ids = ids.at[0, 0].set(0)

    # forward (inverse=False); tolerance covers MXU f32 pass configurations
    emb_out = jax.block_until_ready(embed_forward(ids, emb_table))
    ref_emb = emb_table[ids] * jnp.float32(math.sqrt(NINP))
    assert jnp.allclose(emb_out, ref_emb, atol=1e-2, rtol=1e-2)

    # forward (inverse=True) on the embedded activations (bf16 MXU path)
    dec_out = jax.block_until_ready(decode_inverse(emb_out, w_dec))
    ref_dec_bf16 = jnp.einsum(
        "bsd,vd->bsv",
        emb_out.astype(jnp.bfloat16), w_dec.astype(jnp.bfloat16),
        preferred_element_type=jnp.float32)
    assert jnp.allclose(dec_out, ref_dec_bf16, atol=1e-2, rtol=1e-2)
    # sanity check against full-f32 reference (loose: bf16 input rounding)
    ref_dec_f32 = jnp.einsum("bsd,vd->bsv", ref_emb, w_dec,
                             preferred_element_type=jnp.float32)
    assert jnp.allclose(dec_out, ref_dec_f32, atol=0.5, rtol=5e-2)

    print("KERNEL_OK")
</pallas_src>

<mosaic_0001>
module attributes {stable_mosaic.version = 11 : i64} {
  func.func @_embed_kernel(%arg0: memref<16x1xi32, #tpu.memory_space<vmem>>, %arg1: memref<256x128xf32, #tpu.memory_space<vmem>>, %arg2: memref<16x128xf32, #tpu.memory_space<vmem>>) attributes {dimension_semantics = [], scalar_prefetch = 0 : i64, scratch_operands = 0 : i64, tpu.core_type = #tpu.core_type<tc>} {
    %c0 = arith.constant 0 : index
    %c0_0 = arith.constant 0 : index
    %0 = vector.load %arg0[%c0, %c0_0] : memref<16x1xi32, #tpu.memory_space<vmem>>, vector<16x1xi32>
    %1 = tpu.iota {dimensions = array<i32: 1>} : vector<16x256xi32>
    %2 = vector.broadcast %0 : vector<16x1xi32> to vector<16x256xi32>
    %3 = arith.cmpi eq, %1, %2 : vector<16x256xi32>
    %4 = arith.extui %3 : vector<16x256xi1> to vector<16x256xi32>
    %5 = arith.sitofp %4 : vector<16x256xi32> to vector<16x256xf32>
    %c0_1 = arith.constant 0 : index
    %c0_2 = arith.constant 0 : index
    %6 = vector.load %arg1[%c0_1, %c0_2] : memref<256x128xf32, #tpu.memory_space<vmem>>, vector<256x128xf32>
    %cst = arith.constant dense<0.000000e+00> : vector<16x128xf32>
    %7 = tpu.matmul %5, %6, %cst {dimension_numbers = #tpu.dot_dimension_numbers<[1], [0], [0], [1], [0, 0, 1, 1], [], []>} : vector<16x256xf32>, vector<256x128xf32>, vector<16x128xf32> -> vector<16x128xf32>
    %cst_3 = arith.constant 11.3137083 : f32
    %8 = vector.broadcast %cst_3 : f32 to vector<16x128xf32>
    %9 = arith.mulf %7, %8 : vector<16x128xf32>
    %c0_4 = arith.constant 0 : index
    %c0_5 = arith.constant 0 : index
    %10 = vector.load %arg2[%c0_4, %c0_5] : memref<16x128xf32, #tpu.memory_space<vmem>>, vector<16x128xf32>
    tpu.vector_store %arg2[%c0_4, %c0_5], %9 {strides = array<i32>} : memref<16x128xf32, #tpu.memory_space<vmem>>, vector<16x128xf32>,
    return
  }
}

</mosaic_0001>

<bundles_post_ra>
// kernel: tpu_custom_call.1
= control target key start
LH: loop header
LB: loop body
LE: loop exit
PB: predicated region body
PF: predicated region fallthrough
CT: control target
= control target key end

     0   :  { %7 = vsyncpa [#allocation3], 0  ;;  %s383_s0 = inlined_call_operand.vmem [shape: s32[16,1], index: 0, kind: input, shape index: {}]   ;;  %s384_s1 = inlined_call_operand.hbm [shape: f32[256,128], index: 1, kind: input, shape index: {}]   ;;  %s385_s2 = inlined_call_operand.hbm [shape: f32[16,128], index: 2, kind: output, shape index: {}]  }
   0x1   :  { %8 = vsyncpa [#allocation4], 0  ;;  %s326_s9 = smov [#allocation2]   ;;  %s278_s13 = scalar_lea.hbm %s384_s1, 4096 }
   0x2   :  { %s16_s10 = sshll.u32 %s326_s9, 4  ;;  %p279_p0 = scmp.ne.s32.totalorder %s384_s1, %s278_s13  ;;  %s17_s10 = int_to_ptr.vmem [resolvable:$true] %s16_s10 }
   0x3   :  { %p282_p1 = scmp.lt.u32.totalorder %s278_s13, %s384_s1 }
   0x5   :  { %p284_p2 = pnand %p282_p1, %p279_p0 }
   0x7   :  { %287 = shalt.err (!%p284_p2)
}
   0x8   :  { %s288_s18 = scalar_lea.vmem %s17_s10, 4096  ;;  %p293_p4 = scmp.lt.s32.totalorder %s17_s10, %s17_s10 }
   0x9   :  { %p289_p3 = scmp.ne.s32.totalorder %s17_s10, %s288_s18  ;;  %p294_p5 = scmp.lt.s32.totalorder %s288_s18, %s288_s18 }
   0xb   :  { %p295_p6 = por %p294_p5, %p293_p4 }
   0xd   :  { %p296_p7 = pnand %p295_p6, %p289_p3 }
   0xf   :  { %299 = shalt.err (!%p296_p7)
}
  0x10   :  { %s327_s19 = smov 128   ;;  %s328_s20 = smov 8  }
  0x11   :  { %22 = dma.hbm_to_vmem [thread:$0]  %s384_s1, 4096, %s17_s10, [#allocation3], %s327_s19, %s327_s19, %s328_s20  }
  0x12   :  { %322 = dma.done.wait [#allocation3], 4096  }
  0x13   :  { %323 = vsyncadd [#allocation3], 4294963200  ;;  %v329_v0 = vmov 0   ;;  %v26_v1 = vld [vmem:[%s383_s0] sm:$0xff]  ;;  %v27_v2 = vld [vmem:[%s383_s0 + $0x8] sm:$0xff]  ;;  %v28_v51 = vlaneseq  ;;  %v330_v55 = vmov 1.0  }
  0x14   :  { %277 = vset.pattern.permute.xlu0 %v329_v0  ;;  %v65_v3 = vld [vmem:[#allocation2 + $0x80] sm:$0xff]  ;;  %v66_v4 = vld [vmem:[#allocation2 + $0x88] sm:$0xff]  ;;  %v67_v9 = vld [vmem:[#allocation2 + $0x90] sm:$0xff]  ;;  %s331_s0 = smov [#allocation5]  }
  0x15   :  { %32 = vperm.xlu0 %277, %v26_v1   ;;  %v49_v5 = vld [vmem:[#allocation2] sm:$0xff]  ;;  %v50_v6 = vld [vmem:[#allocation2 + $0x8] sm:$0xff]  ;;  %v223_v7 = vpack.c.bf16 %v66_v4, %v65_v3  ;;  %v68_v10 = vld [vmem:[#allocation2 + $0x98] sm:$0xff]  ;;  %v29_v52 = vand.u32 127, %v28_v51  ;;  %s165_s1 = sshll.u32 %s331_s0, 4  ;;  %s166_s1 = int_to_ptr.vmem [resolvable:$true] %s165_s1 }
  0x16   :  { %v225_v8 = vpack.c.bf16 %v50_v6, %v49_v5  ;;  %v51_v11 = vld [vmem:[#allocation2 + $0x10] sm:$0xff]  ;;  %v227_v12 = vpack.c.bf16 %v68_v10, %v67_v9  ;;  %v52_v13 = vld [vmem:[#allocation2 + $0x18] sm:$0xff]  ;;  %v69_v14 = vld [vmem:[#allocation2 + $0xa0] sm:$0xff]  ;;  %s300_s27 = scalar_lea.vmem %s166_s1, 256  ;;  %p305_p9 = scmp.lt.s32.totalorder %s166_s1, %s166_s1 }
  0x17   :  { %v70_v15 = vld [vmem:[#allocation2 + $0xa8] sm:$0xff]  ;;  %224 = vmatprep.subr.bf16.mxu0 %v223_v7  ;;  %255 = vmatprep.subr.bf16.mxu1 %v223_v7  ;;  %v229_v16 = vpack.c.bf16 %v52_v13, %v51_v11  ;;  %v53_v18 = vld [vmem:[#allocation2 + $0x20] sm:$0xff]  ;;  %v71_v20 = vld [vmem:[#allocation2 + $0xb0] sm:$0xff]  ;;  %v30_v53 = vadd.s32 128, %v29_v52  ;;  %p301_p8 = scmp.ne.s32.totalorder %s166_s1, %s300_s27  ;;  %p306_p10 = scmp.lt.s32.totalorder %s300_s27, %s300_s27 }
  0x18   :  { %226 = vmatpush3.bf16.msra.mxu0 %v225_v8  ;;  %263 = vmatpush3.bf16.msra.mxu1 %v225_v8  ;;  %v231_v17 = vpack.c.bf16 %v70_v15, %v69_v14  ;;  %v54_v19 = vld [vmem:[#allocation2 + $0x28] sm:$0xff]  ;;  %v72_v21 = vld [vmem:[#allocation2 + $0xb8] sm:$0xff]  ;;  %v55_v24 = vld [vmem:[#allocation2 + $0x30] sm:$0xff] }
  0x19   :  { %35 = vperm.xlu0 %277, %v27_v2   ;;  %228 = vmatprep.subr.bf16.mxu0 %v227_v12  ;;  %v233_v22 = vpack.c.bf16 %v54_v19, %v53_v18  ;;  %v235_v23 = vpack.c.bf16 %v72_v21, %v71_v20  ;;  %v56_v25 = vld [vmem:[#allocation2 + $0x38] sm:$0xff]  ;;  %v73_v26 = vld [vmem:[#allocation2 + $0xc0] sm:$0xff]  ;;  %v74_v27 = vld [vmem:[#allocation2 + $0xc8] sm:$0xff]  ;;  %p307_p11 = por %p306_p10, %p305_p9 }
  0x1a   :  { %256 = vmatprep.subr.bf16.mxu1 %v227_v12  ;;  %v237_v28 = vpack.c.bf16 %v56_v25, %v55_v24  ;;  %v239_v29 = vpack.c.bf16 %v74_v27, %v73_v26  ;;  %v57_v30 = vld [vmem:[#allocation2 + $0x40] sm:$0xff]  ;;  %v58_v31 = vld [vmem:[#allocation2 + $0x48] sm:$0xff]  ;;  %v75_v32 = vld [vmem:[#allocation2 + $0xd0] sm:$0xff] }
  0x1b   :  { %v76_v33 = vld [vmem:[#allocation2 + $0xd8] sm:$0xff]  ;;  %v241_v34 = vpack.c.bf16 %v58_v31, %v57_v30  ;;  %v59_v36 = vld [vmem:[#allocation2 + $0x50] sm:$0xff]  ;;  %v77_v38 = vld [vmem:[#allocation2 + $0xe0] sm:$0xff]  ;;  %p308_p12 = pnand %p307_p11, %p301_p8 }
  0x1c   :  { %230 = vmatpush3.bf16.msra.mxu0 %v229_v16  ;;  %264 = vmatpush3.bf16.msra.mxu1 %v229_v16  ;;  %v243_v35 = vpack.c.bf16 %v76_v33, %v75_v32  ;;  %v60_v37 = vld [vmem:[#allocation2 + $0x58] sm:$0xff]  ;;  %v78_v39 = vld [vmem:[#allocation2 + $0xe8] sm:$0xff]  ;;  %v61_v42 = vld [vmem:[#allocation2 + $0x60] sm:$0xff] }
  0x1d   :  { %232 = vmatprep.subr.bf16.mxu0 %v231_v17  ;;  %257 = vmatprep.subr.bf16.mxu1 %v231_v17  ;;  %v245_v40 = vpack.c.bf16 %v60_v37, %v59_v36  ;;  %v247_v41 = vpack.c.bf16 %v78_v39, %v77_v38  ;;  %v62_v43 = vld [vmem:[#allocation2 + $0x68] sm:$0xff]  ;;  %v79_v44 = vld [vmem:[#allocation2 + $0xf0] sm:$0xff]  ;;  %v80_v45 = vld [vmem:[#allocation2 + $0xf8] sm:$0xff] }
  0x1e   :  { %v249_v46 = vpack.c.bf16 %v62_v43, %v61_v42  ;;  %v251_v47 = vpack.c.bf16 %v80_v45, %v79_v44  ;;  %v63_v48 = vld [vmem:[#allocation2 + $0x70] sm:$0xff]  ;;  %v64_v49 = vld [vmem:[#allocation2 + $0x78] sm:$0xff] }
  0x1f   :  { %v253_v50 = vpack.c.bf16 %v64_v49, %v63_v48 }
  0x20   :  { %234 = vmatpush3.bf16.msra.mxu0 %v233_v22  ;;  %265 = vmatpush3.bf16.msra.mxu1 %v233_v22 }
  0x21   :  { %236 = vmatprep.subr.bf16.mxu0 %v235_v23  ;;  %258 = vmatprep.subr.bf16.mxu1 %v235_v23 }
  0x24   :  { %238 = vmatpush3.bf16.msra.mxu0 %v237_v28  ;;  %266 = vmatpush3.bf16.msra.mxu1 %v237_v28 }
  0x25   :  { %240 = vmatprep.subr.bf16.mxu0 %v239_v29  ;;  %259 = vmatprep.subr.bf16.mxu1 %v239_v29 }
  0x28   :  { %242 = vmatpush3.bf16.msra.mxu0 %v241_v34  ;;  %267 = vmatpush3.bf16.msra.mxu1 %v241_v34 }
  0x29   :  { %244 = vmatprep.subr.bf16.mxu0 %v243_v35  ;;  %260 = vmatprep.subr.bf16.mxu1 %v243_v35 }
  0x2c   :  { %246 = vmatpush3.bf16.msra.mxu0 %v245_v40  ;;  %268 = vmatpush3.bf16.msra.mxu1 %v245_v40 }
  0x2d   :  { %248 = vmatprep.subr.bf16.mxu0 %v247_v41  ;;  %261 = vmatprep.subr.bf16.mxu1 %v247_v41 }
  0x30   :  { %250 = vmatpush3.bf16.msra.mxu0 %v249_v46  ;;  %269 = vmatpush3.bf16.msra.mxu1 %v249_v46 }
  0x31   :  { %252 = vmatprep.subr.bf16.mxu0 %v251_v47  ;;  %262 = vmatprep.subr.bf16.mxu1 %v251_v47 }
  0x34   :  { %254 = vmatpush3.bf16.msra.mxu0 %v253_v50  ;;  %270 = vmatpush3.bf16.msra.mxu1 %v253_v50 }
  0x94   :  { %v33_v54 = vpop.permute.xlu0 %32 }
  0x95   :  { %vm37_vm0 = vcmp.eq.s32.totalorder %v29_v52, %v33_v54  ;;  %vm38_vm1 = vcmp.eq.s32.totalorder %v30_v53, %v33_v54 }
  0x96   :  { %181 = vmatprep.mubr.msk.f32.mxu0 %vm38_vm1, %v330_v55 }
  0x97   :  { %182 = vmatmul.mubr.msk.f32.vlgmr.msra.gmra.mrb[0].mxu0 %vm37_vm0, %v330_v55 }
  0x98   :  { %v36_v56 = vpop.permute.xlu0 %35 }
  0x99   :  { %vm39_vm2 = vcmp.eq.s32.totalorder %v29_v52, %v36_v56  ;;  %vm40_vm3 = vcmp.eq.s32.totalorder %v30_v53, %v36_v56 }
  0x9a   :  { %183 = vmatprep.mubr.msk.f32.mxu1 %vm40_vm3, %v330_v55 }
  0x9b   :  { %184 = vmatmul.mubr.msk.f32.vlgmr.msra.gmra.mrb[0].mxu1 %vm39_vm2, %v330_v55 }
 0x16a   :  { %v217_v57 = vpop.f32.mrb[0].mxu0 }
 0x16b   :  { %v218_v58 = vpop.f32.mrb[1].mxu0 }
 0x16c   :  { %v219_v59 = vadd.f32 %v218_v58, %v217_v57 }
 0x16e   :  { %v156_v60 = vmul.f32 11.313708, %v219_v59  ;;  %v220_v61 = vpop.f32.mrb[0].mxu1 }
 0x16f   :  { %v221_v62 = vpop.f32.mrb[1].mxu1 }
 0x170   :  { %158 = vst [vmem:[#allocation5] sm:$0xff] %v156_v60  ;;  %v222_v63 = vadd.f32 %v221_v62, %v220_v61 }
 0x172   :  { %v157_v0 = vmul.f32 11.313708, %v222_v63 }
 0x174   :  { %159 = vst [vmem:[#allocation5 + $0x8] sm:$0xff] %v157_v0 }
 0x175   :  { %311 = shalt.err (!%p308_p12)
}
 0x176   :  { %s312_s30 = scalar_lea.hbm %s385_s2, 256 }
 0x177   :  { %p313_p13 = scmp.ne.s32.totalorder %s385_s2, %s312_s30  ;;  %p316_p0 = scmp.lt.u32.totalorder %s312_s30, %s385_s2 }
 0x179   :  { %p318_p1 = pnand %p316_p0, %p313_p13 }
 0x17b   :  { %321 = shalt.err (!%p318_p1)
}
 0x17c   :  { %171 = dma.vmem_to_hbm [thread:$0]  %s166_s1, 256, %s385_s2, [#allocation4], %s327_s19, %s327_s19, %s328_s20  }
 0x17d   :  { %324 = dma.done.wait [#allocation4], 256  }
 0x17e   :  { %325 = vsyncadd [#allocation4], 4294967040 }
 0x17f   :  { %175 = vsyncpa [#allocation3], 1 }
 0x180   :  { %176 = vsyncpa [#allocation4], 1 }

</bundles_post_ra>
